<compile_context>
chip_gen: v6e
topology: v6e:2x2x1
jax: 0.10.0
libtpu: 0.0.40
codegen_flags: <defaults>
</compile_context>

<pallas_src>
import jax
import jax.numpy as jnp
from jax.experimental import pallas as pl
from jax.experimental.pallas import tpu as pltpu


def _vmem_capacity_bytes():
    """Physical VMEM per TensorCore; conservative 64 MiB (v7x) if the query fails."""
    try:
        cap = int(getattr(pltpu.get_tpu_info(), "vmem_capacity_bytes", 0))
        if cap > 0:
            return cap
    except Exception:
        pass
    return 64 * 1024 * 1024


def _pick_spatial_tile(hw, c, itemsize, per_buffer_bytes):
    """Largest lane-dense spatial tile (multiple of 128, or the full extent) whose
    (1, C, t_hw) input block fits the per-buffer VMEM budget."""
    lanes_cap = max(128, (per_buffer_bytes // max(1, c * itemsize)) // 128 * 128)
    if hw <= lanes_cap:
        return hw            # whole spatial extent in a single block (fits budget)
    return lanes_cap         # tail handled with a cdiv grid + in-kernel lane mask


def _make_ce_kernel(t_hw, hw_total, needs_mask, one_hot):
    def kernel(x_ref, t_ref, out_ref):
        s = pl.program_id(1)
        x = x_ref[...].astype(jnp.float32)           # (1, C, t_hw)
        t = t_ref[...]                               # native dtype, no f32 copy
        C = x.shape[1]

        if one_hot:
            # Fast path: target is a one-hot distribution along the channel axis.
            picked = jnp.sum(x * t.astype(jnp.float32), axis=1, keepdims=True)
        else:
            # torch.argmax(target, dim=1) with first-max tie-break, then gather logit.
            cidx = jax.lax.broadcasted_iota(jnp.int32, t.shape, 1)
            tmax = jnp.max(t, axis=1, keepdims=True)
            idx = jnp.min(jnp.where(t == tmax, cidx, C), axis=1, keepdims=True)
            picked = jnp.sum(jnp.where(cidx == idx, x, 0.0), axis=1, keepdims=True)

        # Numerically stable logsumexp over the channel (sublane) axis.
        xmax = jnp.max(x, axis=1, keepdims=True)
        lse = xmax + jnp.log(jnp.sum(jnp.exp(x - xmax), axis=1, keepdims=True))
        loss = lse - picked                          # (1, 1, t_hw)

        if needs_mask:
            lane = jax.lax.broadcasted_iota(jnp.int32, loss.shape, 2)
            loss = jnp.where(s * t_hw + lane < hw_total, loss, 0.0)

        @pl.when(s == 0)
        def _():
            out_ref[...] = jnp.zeros_like(out_ref)
        out_ref[...] += jnp.reshape(jnp.sum(loss), (1, 1, 1))

    return kernel


def cross_entropy_pallas(x_nchw, target_nchw, *, assume_one_hot_target=False,
                         per_buffer_bytes=None):
    """Equivalent of CrossEntropy(is_weight=False).forward(input, target)."""
    # TODO(synk): weighted path (is_weight=True) not implemented; module default is unweighted.
    # TODO(synk): vocab-scale C would need channel tiling with an online logsumexp.
    N, C, H, W = x_nchw.shape
    HW = H * W
    M = N * HW

    # Pure reshapes (contiguous views): keep NCHW order, spatial axis becomes lanes.
    xr = x_nchw.reshape(N, C, HW)
    tr = target_nchw.reshape(N, C, HW)

    x_isz = jnp.dtype(x_nchw.dtype).itemsize
    t_isz = jnp.dtype(target_nchw.dtype).itemsize

    vmem_cap = _vmem_capacity_bytes()
    if per_buffer_bytes is None:
        # 2 inputs x 2 pipeline buffers x tile must leave headroom:
        # 64 MiB VMEM (v7x) -> 4 MiB/buffer; 128 MiB (v5e/v6e) -> 8 MiB/buffer.
        per_buffer_bytes = min(8 << 20, max(1 << 20, vmem_cap // 16))

    t_hw = _pick_spatial_tile(HW, C, max(x_isz, t_isz), per_buffer_bytes)
    grid = (N, pl.cdiv(HW, t_hw))
    needs_mask = (HW % t_hw) != 0

    vmem_limit = int(min(vmem_cap, 4 * per_buffer_bytes + (8 << 20)))

    elems = N * C * HW
    cost = pl.CostEstimate(
        flops=10 * elems,
        transcendentals=elems,
        bytes_accessed=elems * (x_isz + t_isz) + N * 4,
    )

    kernel = _make_ce_kernel(t_hw, HW, needs_mask, assume_one_hot_target)

    partials = pl.pallas_call(
        kernel,
        out_shape=jax.ShapeDtypeStruct((N, 1, 1), jnp.float32),
        grid_spec=pltpu.PrefetchScalarGridSpec(
            num_scalar_prefetch=0,
            grid=grid,
            in_specs=[
                pl.BlockSpec((1, C, t_hw), lambda n, s: (n, 0, s)),
                pl.BlockSpec((1, C, t_hw), lambda n, s: (n, 0, s)),
            ],
            out_specs=pl.BlockSpec((1, 1, 1), lambda n, s: (n, 0, 0)),
        ),
        compiler_params=pltpu.CompilerParams(
            # N is "parallel" (feeds megacore, module default batchsize=2); the
            # spatial axis carries the resident accumulator so it is "arbitrary".
            dimension_semantics=("parallel", "arbitrary"),
            vmem_limit_bytes=vmem_limit,
        ),
        cost_estimate=cost,
    )(xr, tr)

    # Tiny final reduction + mean normalization in plain JAX.
    return jnp.sum(partials) / M


def _reference(x_nchw, target_nchw):
    # Pure-JAX reference of torch semantics: argmax over dim=1, then F.cross_entropy (mean).
    tidx = jnp.argmax(target_nchw, axis=1)                        # (N, H, W)
    logp = jax.nn.log_softmax(x_nchw.astype(jnp.float32), axis=1)
    picked = jnp.take_along_axis(logp, tidx[:, None, :, :], axis=1)[:, 0]
    return -jnp.mean(picked)


if __name__ == "__main__":
    key = jax.random.PRNGKey(0)
    k1, k2, k3, k4 = jax.random.split(key, 4)

    # Main test: small segmentation-like shapes.
    N, C, H, W = 2, 4, 16, 16
    x = jax.random.normal(k1, (N, C, H, W), dtype=jnp.float32)
    cls = jax.random.randint(k2, (N, H, W), 0, C)
    target = jax.nn.one_hot(cls, C, axis=1, dtype=jnp.float32)    # (N, C, H, W)

    loss = cross_entropy_pallas(x, target)
    jax.block_until_ready(loss)
    ref = _reference(x, target)
    assert jnp.allclose(loss, ref, atol=1e-5, rtol=1e-5), (loss, ref)

    # Optional one-hot fast path must agree for one-hot targets.
    loss_oh = cross_entropy_pallas(x, target, assume_one_hot_target=True)
    jax.block_until_ready(loss_oh)
    assert jnp.allclose(loss_oh, ref, atol=1e-5, rtol=1e-5), (loss_oh, ref)

    # Tail-masking path: force a 128-lane tile so HW=576 needs a masked tail tile.
    N2, C2, H2, W2 = 2, 4, 24, 24                                 # HW = 576 = 4*128 + 64
    x2 = jax.random.normal(k3, (N2, C2, H2, W2), dtype=jnp.float32)
    cls2 = jax.random.randint(k4, (N2, H2, W2), 0, C2)
    target2 = jax.nn.one_hot(cls2, C2, axis=1, dtype=jnp.float32)
    loss2 = cross_entropy_pallas(x2, target2, per_buffer_bytes=128 * C2 * 4)
    jax.block_until_ready(loss2)
    ref2 = _reference(x2, target2)
    assert jnp.allclose(loss2, ref2, atol=1e-5, rtol=1e-5), (loss2, ref2)

    print("KERNEL_OK")
</pallas_src>

<mosaic_0001>
module attributes {stable_mosaic.version = 11 : i64} {
  func.func @kernel(%arg0: i32, %arg1: i32, %arg2: memref<1x4x256xf32, #tpu.memory_space<vmem>>, %arg3: memref<1x4x256xf32, #tpu.memory_space<vmem>>, %arg4: memref<1x1x1xf32, #tpu.memory_space<vmem>>) attributes {dimension_semantics = [#tpu.dimension_semantics<parallel>, #tpu.dimension_semantics<arbitrary>], iteration_bounds = array<i64: 2, 1>, scalar_prefetch = 0 : i64, scratch_operands = 0 : i64, tpu.core_type = #tpu.core_type<tc>, window_params = [{transform_indices = @transform_0, window_bounds = array<i64: 1, 4, 256>}, {transform_indices = @transform_1, window_bounds = array<i64: 1, 4, 256>}, {transform_indices = @transform_2, window_bounds = array<i64: 1, 1, 1>}]} {
    %c0 = arith.constant 0 : index
    %c0_0 = arith.constant 0 : index
    %c0_1 = arith.constant 0 : index
    %0 = vector.load %arg2[%c0, %c0_0, %c0_1] : memref<1x4x256xf32, #tpu.memory_space<vmem>>, vector<1x4x256xf32>
    %c0_2 = arith.constant 0 : index
    %c0_3 = arith.constant 0 : index
    %c0_4 = arith.constant 0 : index
    %1 = vector.load %arg3[%c0_2, %c0_3, %c0_4] : memref<1x4x256xf32, #tpu.memory_space<vmem>>, vector<1x4x256xf32>
    %2 = tpu.iota {dimensions = array<i32: 1>} : vector<1x4x256xi32>
    %cst = arith.constant dense<0xFF800000> : vector<1x256xf32>
    %3 = vector.multi_reduction <maximumf>, %1, %cst [1] : vector<1x4x256xf32> to vector<1x256xf32>
    %4 = vector.shape_cast %3 : vector<1x256xf32> to vector<1x1x256xf32>
    %5 = vector.broadcast %4 : vector<1x1x256xf32> to vector<1x4x256xf32>
    %6 = arith.cmpf oeq, %1, %5 : vector<1x4x256xf32>
    %c4_i32 = arith.constant 4 : i32
    %7 = vector.broadcast %c4_i32 : i32 to vector<1x4x256xi32>
    %8 = arith.select %6, %2, %7 : vector<1x4x256xi1>, vector<1x4x256xi32>
    %cst_5 = arith.constant dense<2147483647> : vector<1x256xi32>
    %9 = vector.multi_reduction <minsi>, %8, %cst_5 [1] : vector<1x4x256xi32> to vector<1x256xi32>
    %10 = vector.shape_cast %9 : vector<1x256xi32> to vector<1x1x256xi32>
    %11 = vector.broadcast %10 : vector<1x1x256xi32> to vector<1x4x256xi32>
    %12 = arith.cmpi eq, %2, %11 : vector<1x4x256xi32>
    %cst_6 = arith.constant 0.000000e+00 : f32
    %13 = vector.broadcast %cst_6 : f32 to vector<1x4x256xf32>
    %14 = arith.select %12, %0, %13 : vector<1x4x256xi1>, vector<1x4x256xf32>
    %cst_7 = arith.constant dense<0.000000e+00> : vector<1x256xf32>
    %15 = vector.multi_reduction <add>, %14, %cst_7 [1] : vector<1x4x256xf32> to vector<1x256xf32>
    %16 = vector.shape_cast %15 : vector<1x256xf32> to vector<1x1x256xf32>
    %cst_8 = arith.constant dense<0xFF800000> : vector<1x256xf32>
    %17 = vector.multi_reduction <maximumf>, %0, %cst_8 [1] : vector<1x4x256xf32> to vector<1x256xf32>
    %18 = vector.shape_cast %17 : vector<1x256xf32> to vector<1x1x256xf32>
    %19 = vector.broadcast %18 : vector<1x1x256xf32> to vector<1x4x256xf32>
    %20 = arith.subf %0, %19 : vector<1x4x256xf32>
    %21 = math.exp %20 : vector<1x4x256xf32>
    %cst_9 = arith.constant dense<0.000000e+00> : vector<1x256xf32>
    %22 = vector.multi_reduction <add>, %21, %cst_9 [1] : vector<1x4x256xf32> to vector<1x256xf32>
    %23 = vector.shape_cast %22 : vector<1x256xf32> to vector<1x1x256xf32>
    %24 = math.log %23 : vector<1x1x256xf32>
    %25 = arith.addf %18, %24 : vector<1x1x256xf32>
    %26 = arith.subf %25, %16 : vector<1x1x256xf32>
    %c0_i32 = arith.constant 0 : i32
    %27 = arith.cmpi eq, %arg1, %c0_i32 : i32
    %28 = arith.extui %27 : i1 to i32
    %c0_i32_10 = arith.constant 0 : i32
    %29 = arith.cmpi ne, %28, %c0_i32_10 : i32
    scf.if %29 {
      %cst_18 = arith.constant 0.000000e+00 : f32
      %38 = vector.broadcast %cst_18 : f32 to vector<1x1x1xf32>
      %c0_19 = arith.constant 0 : index
      %c0_20 = arith.constant 0 : index
      %c0_21 = arith.constant 0 : index
      %39 = vector.load %arg4[%c0_19, %c0_20, %c0_21] : memref<1x1x1xf32, #tpu.memory_space<vmem>>, vector<1x1x1xf32>
      tpu.vector_store %arg4[%c0_19, %c0_20, %c0_21], %38 {strides = array<i32>} : memref<1x1x1xf32, #tpu.memory_space<vmem>>, vector<1x1x1xf32>,
    } else {
    }
    %c0_11 = arith.constant 0 : index
    %c0_12 = arith.constant 0 : index
    %c0_13 = arith.constant 0 : index
    %30 = vector.load %arg4[%c0_11, %c0_12, %c0_13] : memref<1x1x1xf32, #tpu.memory_space<vmem>>, vector<1x1x1xf32>
    %31 = vector.shape_cast %26 : vector<1x1x256xf32> to vector<1x1x1x256xf32>
    %cst_14 = arith.constant dense<0.000000e+00> : vector<1xf32>
    %32 = vector.multi_reduction <add>, %31, %cst_14 [1, 2, 3] : vector<1x1x1x256xf32> to vector<1xf32>
    %33 = vector.shape_cast %32 : vector<1xf32> to vector<1x1x1x1xf32>
    %34 = vector.extract %33[0, 0, 0, 0] : f32 from vector<1x1x1x1xf32>
    %35 = vector.broadcast %34 : f32 to vector<1x1x1xf32>
    %36 = arith.addf %30, %35 : vector<1x1x1xf32>
    %c0_15 = arith.constant 0 : index
    %c0_16 = arith.constant 0 : index
    %c0_17 = arith.constant 0 : index
    %37 = vector.load %arg4[%c0_15, %c0_16, %c0_17] : memref<1x1x1xf32, #tpu.memory_space<vmem>>, vector<1x1x1xf32>
    tpu.vector_store %arg4[%c0_15, %c0_16, %c0_17], %36 {strides = array<i32>} : memref<1x1x1xf32, #tpu.memory_space<vmem>>, vector<1x1x1xf32>,
    return
  }
  func.func @transform_0(%arg0: i32, %arg1: i32) -> (i32, i32, i32) {
    %c0_i32 = arith.constant 0 : i32
    %c0_i32_0 = arith.constant 0 : i32
    return %arg0, %c0_i32, %arg1 : i32, i32, i32
  }
  func.func @transform_1(%arg0: i32, %arg1: i32) -> (i32, i32, i32) {
    %c0_i32 = arith.constant 0 : i32
    %c0_i32_0 = arith.constant 0 : i32
    return %arg0, %c0_i32, %arg1 : i32, i32, i32
  }
  func.func @transform_2(%arg0: i32, %arg1: i32) -> (i32, i32, i32) {
    %c0_i32 = arith.constant 0 : i32
    %c0_i32_0 = arith.constant 0 : i32
    %c0_i32_1 = arith.constant 0 : i32
    return %arg0, %c0_i32, %c0_i32_0 : i32, i32, i32
  }
}

</mosaic_0001>

<bundles_post_ra>
// kernel: tpu_custom_call.1
= control target key start
LH: loop header
LB: loop body
LE: loop exit
PB: predicated region body
PF: predicated region fallthrough
CT: control target
= control target key end

     0   :  { %7 = vsyncpa [#allocation3], 0  ;;  %s838_s0 = inlined_call_operand.hbm [shape: f32[2,4,256], index: 0, kind: input, shape index: {}]   ;;  %s839_s1 = inlined_call_operand.hbm [shape: f32[2,4,256], index: 1, kind: input, shape index: {}]   ;;  %s840_s2 = inlined_call_operand.vmem [shape: f32[2,1,1], index: 2, kind: output, shape index: {}]  }
   0x1   :  { %9 = vsyncpa [#allocation3 + $0x1], 0 }
   0x2   :  { %10 = vsyncpa [#allocation5], 0 }
   0x3   :  { %12 = vsyncpa [#allocation5 + $0x1], 0  ;;  %s681_s9 = smov 0   ;;  %s683_s10 = smov 0  }
   0x4   :  { %s685_s11 = smov 0   ;;  %s687_s12 = smov 0  }
   0x5   :  { %s689_s13 = smov 0   ;;  %s691_s14 = smov 0  }
   0x6 LB: > { %s461_s15 = sadd.s32 4294967295, %s660_s14   ;;  %s30_s16 = sadd.s32 1, %s656_s13  ;;  %s660_s14 = sphi %s691_s14, %s18_s14   ;;  %s656_s13 = sphi %s689_s13, %s849_s13   ;;  %s652_s12 = sphi %s687_s12, %s848_s12   ;;  %s648_s11 = sphi %s685_s11, %s847_s11   ;;  %s644_s10 = sphi %s683_s10, %s846_s10   ;;  %s640_s9 = sphi %s681_s9, %s845_s9  }
   0x7   : > { %p32_p0 = scmp.ge.s32.totalorder %s30_s16, 2  ;;  %s39_s17 = sadd.s32 1, %s648_s11 }
   0x8   : > { %p46_p1 = scmp.ne.s32.totalorder %s648_s11, %s644_s10  ;;  %p47_p2 = scmp.eq.s32.totalorder %s660_s14, 0 }
   0x9   : > { %s851_s16 = smov (%p32_p0, %s30_s16), 0  ;;  %p52_p4 = scmp.ne.s32.totalorder %s644_s10, %s640_s9 }
   0xa   : > { %p717_p3 = por %p47_p2, %p46_p1  ;;  %s34_s19 = ssub.s32 %s656_s13, %s851_s16 }
   0xb   : > { %p53_p5 = scmp.eq.s32.totalorder %s461_s15, 0  ;;  %p37_p6 = scmp.eq.s32.totalorder %s34_s19, 0 }
   0xc   : > { %p491_p8 = scmp.lt.s32.totalorder %s660_s14, 2  ;;  %s733_s22 = sand.u32 1, %s648_s11  }
   0xd   : > { %p724_p7 = por %p53_p5, %p52_p4  ;;  %s476_s23 = sshll.u32 %s656_s13, 7 }
   0xe   : > { %s730_s21 = scalar_select %p37_p6, %s648_s11, %s39_s17  }
   0xf   : > { %s465_s24 = sshll.u32 %s733_s22, 3  ;;  %s142_s27 = scalar_lea.hbm %s838_s0, %s476_s23 }
  0x10   : > { %s134_s28 = scalar_lea.vmem [#allocation2], %s465_s24  ;;  %p742_p9 = pnand %p491_p8, %p717_p3 }
  0x11   : > { %s144_s29 = sshll.u32 %s134_s28, 4  ;;  %p471_p10 = scmp.ge.s32.totalorder %s660_s14, 1  ;;  %s145_s29 = int_to_ptr.vmem [resolvable:$true] %s144_s29 }
  0x12   : > { %p170_p11 = scmp.lt.s32.totalorder %s660_s14, 3  ;;  %s131_s3 = scalar_lea.sflag [#allocation3], %s733_s22 }
  0x13   : > { %p552_p12 = pneg %p742_p9  ;;  %s563_s4 = scalar_lea.vmem %s145_s29, 128 }
  0x14   : > { %p564_p13 = scmp.ne.s32.totalorder %s145_s29, %s563_s4  ;;  %s662_s5 = smov [#allocation2]  }
  0x15   : > { %s568_s6 = sshll.u32 %s662_s5, 4  ;;  %s569_s6 = int_to_ptr.vmem [resolvable:$false] %s568_s6 }
  0x16   : > { %p566_p0 = pnand %p564_p13, %p552_p12  ;;  %s570_s7 = scalar_lea.vmem %s569_s6, 256 }
  0x17   : > { %p571_p2 = scmp.lt.s32.totalorder %s145_s29, %s569_s6  ;;  %p572_p3 = scmp.lt.s32.totalorder %s570_s7, %s563_s4 }
  0x18   : > { %p567_p1 = pneg %p566_p0 }
  0x19   : > { %p573_p4 = por %p572_p3, %p571_p2 }
  0x1b   : > { %p574_p5 = pnand %p573_p4, %p567_p1 }
  0x1d   : > { %577 = shalt.err (!%p574_p5)
}
  0x1e   : > { %487 = dma.hbm_to_vmem [thread:$0]  (!%p742_p9), %s142_s27, 128, %s145_s29, %s131_s3  }
  0x1f   : > { %p760_p6 = pnand %p471_p10, %p170_p11  ;;  %s163_s17 = scalar_lea.hbm %s839_s1, %s476_s23 }
  0x20   : > { %s155_s18 = scalar_lea.vmem [#allocation4], %s465_s24  ;;  %s152_s25 = scalar_lea.sflag [#allocation5], %s733_s22 }
  0x21   : > { %s165_s19 = sshll.u32 %s155_s18, 4  ;;  %s663_s27 = smov [#allocation4]   ;;  %s166_s19 = int_to_ptr.vmem [resolvable:$true] %s165_s19 }
  0x22   : > { %s591_s26 = scalar_lea.vmem %s166_s19, 128  ;;  %s596_s28 = sshll.u32 %s663_s27, 4  ;;  %s597_s28 = int_to_ptr.vmem [resolvable:$false] %s596_s28 }
  0x23   : > { %p592_p8 = scmp.ne.s32.totalorder %s166_s19, %s591_s26  ;;  %s598_s29 = scalar_lea.vmem %s597_s28, 256 }
  0x24   : > { %p599_p10 = scmp.lt.s32.totalorder %s166_s19, %s597_s28  ;;  %p600_p11 = scmp.lt.s32.totalorder %s598_s29, %s591_s26 }
  0x25   : > { %p594_p13 = pnand %p592_p8, %p552_p12 }
  0x26   : > { %p601_p1 = por %p600_p11, %p599_p10 }
  0x27   : > { %p595_p0 = pneg %p594_p13 }
  0x29   : > { %p602_p2 = pnand %p601_p1, %p595_p0 }
  0x2b   : > { %605 = shalt.err (!%p602_p2)
}
  0x2c   : > { %490 = dma.hbm_to_vmem [thread:$0]  (!%p742_p9), %s163_s17, 128, %s166_s19, %s152_s25  }
  0x2d   : > { %174 = sbr.rel (%p760_p6) target bundleno = 331 (0x14b), region = 28  ;;  %s176_s22 = sand.u32 (!%p760_p6), 1, %s644_s10  }
  0x2e   : > { %s472_s23 = sshll.u32 (!%p760_p6), %s176_s22, 3  ;;  %s177_s24 = scalar_lea.sflag (!%p760_p6), [#allocation3], %s176_s22 }
  0x2f   : > { %s180_s3 = scalar_lea.vmem (!%p760_p6), [#allocation2], %s472_s23 }
  0x32   : > { %631 = dma.done.wait (%p724_p7), %s177_s24, 128  }
  0x33   : > { %633 = vsyncadd (%p724_p7), %s177_s24, 4294967168  ;;  %s186_s4 = scalar_lea.sflag [#allocation5], %s176_s22  ;;  %s189_s5 = scalar_lea.vmem [#allocation4], %s472_s23 }
  0x34   : > { %635 = dma.done.wait (%p724_p7), %s186_s4, 128  }
  0x35   : > { %637 = vsyncadd (%p724_p7), %s186_s4, 4294967168  ;;  %vm225_vm0 = vcmask 1043456   ;;  %v784_v0 = vld [vmem:[%s180_s3] sm:$0xff]  ;;  %v219_v1 = vld [vmem:[%s189_s5] sm:$0xff]  ;;  %v220_v8 = vlaneseq  ;;  %v664_v10 = vmov 839922192  }
  0x36   : > { %v223_v2 = vcombine.high %v219_v1, %v219_v1  ;;  %v226_v3 = vsel %vm225_vm0, %v219_v1, -inf  ;;  %v789_v4 = vcombine.high %v784_v0, %v784_v0  ;;  %v295_v5 = vsel %vm225_vm0, %v784_v0, -inf  ;;  %p215_p7 = scmp.lt.s32.totalorder %s652_s12, 1 }
  0x37   : > { %v227_v6 = vrot.slane %v226_v3, 4  ;;  %v296_v7 = vrot.slane %v295_v5, 4  ;;  %v246_v11 = vunpack.c.l.s4 %v664_v10  ;;  %v221_v21 = vshrl.u32 %v220_v8, 7 }
  0x38   : > { %v233_v9 = vsel %vm225_vm0, %v223_v2, -inf  ;;  %v302_v12 = vsel %vm225_vm0, %v789_v4, -inf  ;;  %vm348_vm10 = vcmask 1040384   ;;  %s853_s12 = smov (!%p215_p7, %s652_s12), 1  ;;  %vm345_vm11 = vcmask 0  }
  0x39   : > { %v228_v13 = vmax.f32 %v226_v3, %v227_v6  ;;  %v234_v14 = vrot.slane %v233_v9, 4  ;;  %v297_v15 = vmax.f32 %v295_v5, %v296_v7  ;;  %v303_v16 = vrot.slane %v302_v12, 4  ;;  %s217_s6 = scalar_lea.vmem %s840_s2, %s853_s12 }
  0x3a   : > { %v247_v22 = vunpack.c.0.s8 %v246_v11 }
  0x3b   : > { %v229_v17 = vrot.slane %v228_v13, 2  ;;  %v235_v18 = vmax.f32 %v233_v9, %v234_v14  ;;  %v298_v19 = vrot.slane %v297_v15, 2  ;;  %v304_v20 = vmax.f32 %v302_v12, %v303_v16 }
  0x3c   : > { %v250_v31 = vsub.s32 %v247_v22, %v221_v21 }
  0x3d   : > { %v230_v23 = vmax.f32 %v228_v13, %v229_v17  ;;  %v236_v24 = vrot.slane %v235_v18, 2  ;;  %v299_v25 = vmax.f32 %v297_v15, %v298_v19  ;;  %v305_v26 = vrot.slane %v304_v20, 2 }
  0x3e   : > { %v251_v38 = vrot.slane %v221_v21, %v250_v31 }
  0x3f   : > { %v231_v27 = vrot.slane %v230_v23, 1  ;;  %v237_v28 = vmax.f32 %v235_v18, %v236_v24  ;;  %v300_v29 = vrot.slane %v299_v25, 1  ;;  %v306_v30 = vmax.f32 %v304_v20, %v305_v26 }
  0x41   : > { %v232_v32 = vmax.f32 %v230_v23, %v231_v27  ;;  %v238_v33 = vrot.slane %v237_v28, 1  ;;  %v796_v34 = vmax.f32 %v299_v25, %v300_v29  ;;  %v307_v35 = vrot.slane %v306_v30, 1 }
  0x43   : > { %v239_v36 = vmax.f32 %v237_v28, %v238_v33  ;;  %v798_v37 = vmax.f32 %v306_v30, %v307_v35 }
  0x45   : > { %v242_v39 = vcombine.low %v232_v32, %v239_v36  ;;  %v311_v40 = vcombine.low %v796_v34, %v798_v37 }
  0x47   : > { %vm244_vm1 = vcmp.eq.f32.partialorder %v219_v1, %v242_v39  ;;  %v313_v41 = vsub.f32 %v784_v0, %v311_v40  ;;  %v665_v40 = vmov 0.0  }
  0x48   : > { %v252_v42 = vsel %vm244_vm1, %v251_v38, 4  ;;  %346 = vst.msk [vmem:[%s217_s6] sm:$0x1] %vm345_vm11, %v665_v40 }
  0x49   : > { %v253_v43 = vcombine.high %v252_v42, %v252_v42  ;;  %v254_v44 = vsel %vm225_vm0, %v252_v42, 2147483647  ;;  %v314_v45 = vmul.f32 1.442695, %v313_v41 }
  0x4a   : > { %v255_v46 = vrot.slane %v254_v44, 4 }
  0x4b   : > { %v264_v47 = vsel %vm225_vm0, %v253_v43, 2147483647  ;;  %544 = vpow2.f32 %v314_v45 }
  0x4c   : > { %vm256_vm2 = vcmp.lt.s32.totalorder %v254_v44, %v255_v46  ;;  %v265_v48 = vrot.slane %v264_v47, 4 }
  0x4d   : > { %v257_v49 = vsel %vm256_vm2, %v254_v44, %v255_v46 }
  0x4e   : > { %v258_v50 = vrot.slane %v257_v49, 2  ;;  %vm266_vm3 = vcmp.lt.s32.totalorder %v264_v47, %v265_v48 }
  0x4f   : > { %v267_v51 = vsel %vm266_vm3, %v264_v47, %v265_v48  ;;  %v347_v46 = vld [vmem:[%s217_s6] sm:$0x1] }
  0x50   : > { %vm259_vm4 = vcmp.lt.s32.totalorder %v257_v49, %v258_v50  ;;  %v268_v52 = vrot.slane %v267_v51, 2 }
  0x51   : > { %v260_v53 = vsel %vm259_vm4, %v257_v49, %v258_v50 }
  0x52   : > { %v261_v54 = vrot.slane %v260_v53, 1  ;;  %vm269_vm5 = vcmp.lt.s32.totalorder %v267_v51, %v268_v52 }
  0x53   : > { %v270_v55 = vsel %vm269_vm5, %v267_v51, %v268_v52 }
  0x54   : > { %vm262_vm6 = vcmp.lt.s32.totalorder %v260_v53, %v261_v54  ;;  %v271_v56 = vrot.slane %v270_v55, 1 }
  0x55   : > { %v263_v57 = vsel %vm262_vm6, %v260_v53, %v261_v54 }
  0x56   : > { %vm272_vm7 = vcmp.lt.s32.totalorder %v270_v55, %v271_v56  ;;  %vm274_vm8 = vcmp.eq.s32.totalorder %v221_v21, %v263_v57 }
  0x57   : > { %v273_v58 = vsel %vm272_vm7, %v270_v55, %v271_v56  ;;  %v279_v62 = vsel %vm274_vm8, %v784_v0, 0.0 }
  0x58   : > { %v545_v59 = vpop.eup %544  ;;  %vm275_vm9 = vcmp.eq.s32.totalorder %v221_v21, %v273_v58  ;;  %v281_v6 = vsel %vm225_vm0, %v279_v62, 0.0 }
  0x59   : > { %v317_v60 = vcombine.high %v545_v59, %v545_v59  ;;  %v319_v61 = vsel %vm225_vm0, %v545_v59, 0.0  ;;  %v280_v2 = vsel %vm275_vm9, %v789_v4, 0.0  ;;  %v282_v10 = vrot.slane %v281_v6, 4 }
  0x5a   : > { %v320_v63 = vrot.slane %v319_v61, 4  ;;  %v288_v9 = vsel %vm225_vm0, %v280_v2, 0.0 }
  0x5b   : > { %v326_v1 = vsel %vm225_vm0, %v317_v60, 0.0  ;;  %v289_v13 = vrot.slane %v288_v9, 4  ;;  %v283_v0 = vadd.f32 %v282_v10, %v281_v6 }
  0x5c   : > { %v321_v3 = vadd.f32 %v320_v63, %v319_v61  ;;  %v327_v5 = vrot.slane %v326_v1, 4 }
  0x5d   : > { %v290_v18 = vadd.f32 %v289_v13, %v288_v9  ;;  %v284_v4 = vrot.slane %v283_v0, 2 }
  0x5e   : > { %v322_v7 = vrot.slane %v321_v3, 2  ;;  %v328_v8 = vadd.f32 %v327_v5, %v326_v1 }
  0x5f   : > { %v291_v20 = vrot.slane %v290_v18, 2  ;;  %v285_v21 = vadd.f32 %v284_v4, %v283_v0 }
  0x60   : > { %v323_v11 = vadd.f32 %v322_v7, %v321_v3  ;;  %v329_v12 = vrot.slane %v328_v8, 2 }
  0x61   : > { %v292_v22 = vadd.f32 %v291_v20, %v290_v18  ;;  %v286_v23 = vrot.slane %v285_v21, 1 }
  0x62   : > { %v324_v14 = vrot.slane %v323_v11, 1  ;;  %v330_v15 = vadd.f32 %v329_v12, %v328_v8 }
  0x63   : > { %v293_v24 = vrot.slane %v292_v22, 1  ;;  %v287_v26 = vadd.f32 %v286_v23, %v285_v21 }
  0x64   : > { %v325_v16 = vadd.f32 %v324_v14, %v323_v11  ;;  %v331_v17 = vrot.slane %v330_v15, 1 }
  0x65   : > { %v294_v29 = vadd.f32 %v293_v24, %v292_v22 }
  0x66   : > { %v332_v19 = vadd.f32 %v331_v17, %v330_v15  ;;  %546 = vlog2.f32 %v325_v16 }
  0x68   : > { %548 = vlog2.f32 %v332_v19 }
  0x73   : > { %v547_v25 = vpop.eup %546 }
  0x74   : > { %v334_v27 = vmul.f32 0.6931472, %v547_v25 }
  0x75   : > { %v549_v28 = vpop.eup %548 }
  0x76   : > { %v336_v30 = vmul.f32 0.6931472, %v549_v28  ;;  %v337_v31 = vadd.f32 %v334_v27, %v796_v34 }
  0x78   : > { %v338_v32 = vadd.f32 %v336_v30, %v798_v37  ;;  %v339_v33 = vsub.f32 %v337_v31, %v287_v26 }
  0x7a   : > { %v340_v35 = vsub.f32 %v338_v32, %v294_v29  ;;  %v349_v36 = vsel %vm348_vm10, %v339_v33, 0.0 }
  0x7c   : > { %v350_v38 = vsel %vm348_vm10, %v340_v35, 0.0 }
  0x7d   : > { %v351_v39 = vadd.f32 %v350_v38, %v349_v36 }
  0x7f   : > { %352 = vadd.xlane.f32.xlu0 %v351_v39 }
 0x108   : > { %v353_v34 = vpop.xlane.xlu0 %352 }
 0x109   : > { %v354_v41 = vrot.slane %v353_v34, 4 }
 0x10b   : > { %v355_v42 = vadd.f32 %v354_v41, %v353_v34 }
 0x10d   : > { %v356_v37 = vrot.slane %v355_v42, 2 }
 0x10f   : > { %v357_v43 = vadd.f32 %v356_v37, %v355_v42 }
 0x111   : > { %v358_v44 = vrot.slane %v357_v43, 1 }
 0x113   : > { %v359_v45 = vadd.f32 %v358_v44, %v357_v43 }
 0x115   : > { %478 = vpush %v359_v45 }
 0x146   : > { %s479_s7 = spop %478 }
 0x147   : > { %v361_v47 = vstv %s479_s7 }
 0x148   : > { %v362_v48 = vadd.f32 %v361_v47, %v347_v46 }
 0x14a   : > { %364 = vst.msk [vmem:[%s217_s6] sm:$0x1] %vm345_vm11, %v362_v48 }
 0x14b PF: > { %s18_s14 = sadd.s32 1, %s660_s14   ;;  %s845_s9 = smov %s644_s10 }
 0x14c   : > { %p15_p9 = scmp.ge.s32.totalorder %s18_s14, 4   ;;  %s846_s10 = smov %s648_s11 }
 0x14d   : > { %s847_s11 = smov %s730_s21  ;;  %s848_s12 = smov %s656_s13 }
 0x14e   : > { %s849_s13 = smov %s851_s16  ;;  %17 = sbr.rel (!%p15_p9) target bundleno = 6 (0x6), region = 85 }
 0x153   :  { %382 = vsyncpa [#allocation3], 1 }
 0x154   :  { %384 = vsyncpa [#allocation3 + $0x1], 1 }
 0x155   :  { %385 = vsyncpa [#allocation5], 1 }
 0x156   :  { %387 = vsyncpa [#allocation5 + $0x1], 1 }

</bundles_post_ra>
